<compile_context>
chip_gen: v5e
topology: v5e:2x2
jax: 0.10.0
libtpu: 0.0.40
codegen_flags: <defaults>
</compile_context>

<pallas_src>
import functools

import numpy as np

import jax
import jax.numpy as jnp
from jax.experimental import pallas as pl
from jax.experimental.pallas import tpu as pltpu

_LANE = 128
_SUB = 8
_SMALL_N_THRESHOLD = 16384            # below this, plain jnp is faster than a launch
_VMEM_INPUT_BUDGET = 12 * 1024 * 1024  # double-buffered input bytes target
_VMEM_LIMIT_BYTES = 32 * 1024 * 1024   # explicit scoped-VMEM limit (safe on v5e..v7x)


def _cdiv(a: int, b: int) -> int:
    return -(-a // b)


def _round_up(x: int, m: int) -> int:
    return ((x + m - 1) // m) * m


# ----------------------------------------------------------------------------
# Kernel
# ----------------------------------------------------------------------------
def _intensity_kernel(*refs, has_pressure: bool, has_mask: bool,
                      use_relative_error: bool, needs_row_mask: bool,
                      rows_valid: int, block_rows: int, steps_per_core: int):
    it = iter(refs)
    pw_ref = next(it)
    tw_ref = next(it)
    pp_ref = next(it) if has_pressure else None
    tp_ref = next(it) if has_pressure else None
    m_ref = next(it) if has_mask else None
    wacc_ref = next(it)                       # (8, 128) resident accumulator
    pacc_ref = next(it) if has_pressure else None
    macc_ref = next(it) if has_mask else None

    step = pl.program_id(1)                   # reduction axis ("arbitrary")

    @pl.when(step == 0)
    def _():
        wacc_ref[...] = jnp.zeros_like(wacc_ref)
        if has_pressure:
            pacc_ref[...] = jnp.zeros_like(pacc_ref)
        if has_mask:
            macc_ref[...] = jnp.zeros_like(macc_ref)

    # Row-validity guard for the (possibly garbage-padded) partial edge block
    # and for any clamped "fake" step beyond the last real block.  jnp.where is
    # used (not multiply) so NaN/Inf in invalid rows cannot leak into the sums.
    if needs_row_mask:
        g = pl.program_id(0) * steps_per_core + step
        row_start = g * block_rows
        row_ids = jax.lax.broadcasted_iota(jnp.int32, (block_rows, 1), 0) + row_start
        valid = row_ids < rows_valid

        def guard(x):
            return jnp.where(valid, x, 0.0)
    else:
        def guard(x):
            return x

    def row_reduce(x):
        # (block_rows, 128) -> (8, 128): pure VPU vreg adds, no cross-lane XLU.
        return x.reshape(-1, _SUB, _LANE).sum(axis=0)

    # Upcast narrow input dtypes on the VPU (free under DMA slack).
    pw = pw_ref[...].astype(jnp.float32)
    tw = tw_ref[...].astype(jnp.float32)
    if use_relative_error:
        wind_err = jnp.abs(pw - tw) * pl.reciprocal(tw + 1e-6, approx=False)
    else:
        d = pw - tw
        wind_err = d * d

    if has_mask:
        m = m_ref[...].astype(jnp.float32)
        wind_err = wind_err * m
        macc_ref[...] += row_reduce(guard(m))

    wacc_ref[...] += row_reduce(guard(wind_err))

    if has_pressure:
        pp = pp_ref[...].astype(jnp.float32)
        tp = tp_ref[...].astype(jnp.float32)
        if use_relative_error:
            press_err = jnp.abs(pp - tp)
        else:
            dp = pp - tp
            press_err = dp * dp
        if has_mask:
            press_err = press_err * m
        pacc_ref[...] += row_reduce(guard(press_err))


# ----------------------------------------------------------------------------
# Plain-jnp path (reference semantics; also the small-n fast path)
# ----------------------------------------------------------------------------
def _jnp_loss(pred_wind, true_wind, pred_pressure, true_pressure, mask,
              wind_weight, pressure_weight, use_relative_error):
    pw = jnp.asarray(pred_wind, jnp.float32)
    tw = jnp.asarray(true_wind, jnp.float32)
    if use_relative_error:
        we = jnp.abs(pw - tw) / (tw + 1e-6)
    else:
        we = (pw - tw) ** 2
    if mask is not None:
        m = jnp.asarray(mask, jnp.float32)
        wind_loss = jnp.sum(we * m) / jnp.sum(m)
    else:
        wind_loss = jnp.mean(we)
    total = wind_weight * wind_loss
    if pred_pressure is not None and true_pressure is not None:
        pp = jnp.asarray(pred_pressure, jnp.float32)
        tp = jnp.asarray(true_pressure, jnp.float32)
        if use_relative_error:
            pe = jnp.abs(pp - tp)
        else:
            pe = (pp - tp) ** 2
        if mask is not None:
            press_loss = jnp.sum(pe * jnp.asarray(mask, jnp.float32)) / jnp.sum(
                jnp.asarray(mask, jnp.float32))
        else:
            press_loss = jnp.mean(pe)
        total = total + pressure_weight * press_loss
    return total


# ----------------------------------------------------------------------------
# Public entry point
# ----------------------------------------------------------------------------
def intensity_loss(pred_wind,
                   true_wind,
                   pred_pressure=None,
                   true_pressure=None,
                   mask=None,
                   *,
                   wind_weight: float = 1.0,
                   pressure_weight: float = 0.5,
                   use_relative_error: bool = True,
                   max_block_rows=None,
                   small_n_threshold: int = _SMALL_N_THRESHOLD):
    """JAX/Pallas equivalent of IntensityLoss.forward.  Returns a scalar f32."""
    pred_wind = jnp.asarray(pred_wind)
    true_wind = jnp.asarray(true_wind)
    has_pressure = pred_pressure is not None and true_pressure is not None
    has_mask = mask is not None
    n = int(pred_wind.size)

    # Small-n fast path: fixed launch/tiling overhead dwarfs the work.
    if n <= small_n_threshold:
        return _jnp_loss(pred_wind, true_wind,
                         pred_pressure if has_pressure else None,
                         true_pressure if has_pressure else None,
                         mask, wind_weight, pressure_weight, use_relative_error)

    # ---- gather streams (only the arrays actually needed) -------------------
    streams = [pred_wind, true_wind]
    if has_pressure:
        streams += [jnp.asarray(pred_pressure), jnp.asarray(true_pressure)]
    if has_mask:
        streams.append(jnp.asarray(mask))

    def _stream_dtype(x):
        dt = x.dtype
        if dt == jnp.float32 or dt == jnp.bfloat16:
            return dt                       # stream natively, upcast in-kernel
        if dt == jnp.int8 or dt == jnp.bool_:
            return jnp.int8                 # 1-byte mask stream
        return jnp.float32                  # anything else -> f32

    stream_dtypes = [_stream_dtype(x) for x in streams]
    bytes_per_row = sum(_LANE * np.dtype(d).itemsize for d in stream_dtypes)

    # ---- static tiling decisions --------------------------------------------
    rows = _cdiv(n, _LANE)
    pad_cols = rows * _LANE - n            # < 128; only padded when nonzero

    target_rows = _VMEM_INPUT_BUDGET // (2 * bytes_per_row)
    if max_block_rows is not None:
        target_rows = min(target_rows, int(max_block_rows))
    block_rows = max(32, (target_rows // 32) * 32)   # multiple of 32: int8/bf16 tiles
    block_rows = min(block_rows, _round_up(rows, 32))

    num_blocks = _cdiv(rows, block_rows)

    # 2-way core split only on multi-TensorCore chips (v7x); single-TC v5e/v6e
    # keep nc = 1 so no fake zero-traffic blocks are ever streamed.
    try:
        device_kind = jax.devices()[0].device_kind.lower()
    except Exception:  # pragma: no cover - defensive
        device_kind = ""
    core_parallel = getattr(pltpu, "CORE_PARALLEL", None)
    nc = 2 if (num_blocks >= 2 and "v7" in device_kind
               and core_parallel is not None) else 1
    steps_per_core = _cdiv(num_blocks, nc)
    grid_blocks = nc * steps_per_core

    needs_row_mask = (rows % block_rows != 0) or (grid_blocks != num_blocks)

    # ---- prep inputs: no astype/pad copies unless strictly required ---------
    def _prep(x, dt):
        if x.dtype != dt:
            x = x.astype(dt)               # only bool->int8 / exotic->f32
        flat = x.reshape(-1)               # free metadata op (contiguous)
        if pad_cols:
            flat = jnp.concatenate([flat, jnp.zeros((pad_cols,), dt)])
        return flat.reshape(rows, _LANE)   # free when pad_cols == 0

    inputs = [_prep(x, d) for x, d in zip(streams, stream_dtypes)]

    # ---- specs ---------------------------------------------------------------
    last_block = num_blocks - 1
    if grid_blocks != num_blocks:
        def in_index(c, i):
            return (jnp.minimum(c * steps_per_core + i, last_block), 0)
    else:
        def in_index(c, i):
            return (c * steps_per_core + i, 0)

    in_spec = pl.BlockSpec((block_rows, _LANE), in_index)
    out_spec = pl.BlockSpec((_SUB, _LANE), lambda c, i: (c, 0))
    acc_shape = jax.ShapeDtypeStruct((nc * _SUB, _LANE), jnp.float32)
    n_outs = 1 + int(has_pressure) + int(has_mask)

    kernel = functools.partial(_intensity_kernel,
                               has_pressure=has_pressure,
                               has_mask=has_mask,
                               use_relative_error=use_relative_error,
                               needs_row_mask=needs_row_mask,
                               rows_valid=rows,
                               block_rows=block_rows,
                               steps_per_core=steps_per_core)

    dim_sems = ((core_parallel if nc == 2 else pltpu.ARBITRARY), pltpu.ARBITRARY)

    outs = pl.pallas_call(
        kernel,
        out_shape=tuple(acc_shape for _ in range(n_outs)),
        grid_spec=pltpu.PrefetchScalarGridSpec(
            num_scalar_prefetch=0,
            grid=(nc, steps_per_core),
            in_specs=[in_spec] * len(inputs),
            out_specs=[out_spec] * n_outs,
        ),
        compiler_params=pltpu.CompilerParams(
            dimension_semantics=dim_sems,
            vmem_limit_bytes=_VMEM_LIMIT_BYTES),
    )(*inputs)

    # ---- tiny final reduction + weighted combination in JAX glue ------------
    wind_sum = jnp.sum(outs[0])
    idx = 1
    if has_pressure:
        press_sum = jnp.sum(outs[idx])
        idx += 1
    if has_mask:
        denom = jnp.sum(outs[idx])
    else:
        denom = jnp.float32(n)             # padding / invalid rows contribute 0

    total = wind_weight * (wind_sum / denom)
    if has_pressure:
        total = total + pressure_weight * (press_sum / denom)
    return total


# ----------------------------------------------------------------------------
# Self-test
# ----------------------------------------------------------------------------
if __name__ == "__main__":
    key = jax.random.PRNGKey(0)
    k1, k2, k3, k4, k5 = jax.random.split(key, 5)

    # 1) Small shapes consistent with the module (batch of storms, time steps):
    #    exercises the small-n jnp fast path (kernel launch would be overhead).
    B, T = 2, 8
    true_wind = 40.0 + 20.0 * jax.random.uniform(k1, (B, T), dtype=jnp.float32)
    pred_wind = true_wind + 2.0 * jax.random.normal(k2, (B, T), dtype=jnp.float32)
    true_press = 980.0 + 15.0 * jax.random.uniform(k3, (B, T), dtype=jnp.float32)
    pred_press = true_press + 3.0 * jax.random.normal(k4, (B, T), dtype=jnp.float32)
    mask = (jax.random.uniform(k5, (B, T)) > 0.3).astype(jnp.float32)

    out1 = intensity_loss(pred_wind, true_wind, pred_press, true_press, mask,
                          wind_weight=1.0, pressure_weight=0.5,
                          use_relative_error=True)
    jax.block_until_ready(out1)
    ref1 = _jnp_loss(pred_wind, true_wind, pred_press, true_press, mask,
                     1.0, 0.5, True)
    assert jnp.allclose(out1, ref1, rtol=1e-5, atol=1e-5), (out1, ref1)

    # 2) Kernel path: f32, wind-only, no mask, MSE.  n is a multiple of 128 so
    #    no pad copy; max_block_rows=128 forces multi-step accumulation and a
    #    partial last block (row-mask path), plus the 2-core split on v7x.
    kk = jax.random.split(jax.random.PRNGKey(1), 2)
    B2, T2 = 160, 640
    tw2 = 40.0 + 20.0 * jax.random.uniform(kk[0], (B2, T2), dtype=jnp.float32)
    pw2 = tw2 + 2.0 * jax.random.normal(kk[1], (B2, T2), dtype=jnp.float32)
    out2 = intensity_loss(pw2, tw2,
                          wind_weight=1.0, pressure_weight=0.5,
                          use_relative_error=False, max_block_rows=128)
    jax.block_until_ready(out2)
    ref2 = _jnp_loss(pw2, tw2, None, None, None, 1.0, 0.5, False)
    assert jnp.allclose(out2, ref2, rtol=1e-4, atol=1e-5), (out2, ref2)

    # 3) Kernel path: ragged size (not a multiple of 128), native bf16 wind /
    #    pressure streams and a bool (int8) mask stream, relative error,
    #    multi-step accumulation with a partial edge block.
    kk = jax.random.split(jax.random.PRNGKey(2), 5)
    B3, T3 = 300, 301
    tw3_f = 40.0 + 20.0 * jax.random.uniform(kk[0], (B3, T3), dtype=jnp.float32)
    pw3_f = tw3_f + 2.0 * jax.random.normal(kk[1], (B3, T3), dtype=jnp.float32)
    tp3_f = 980.0 + 15.0 * jax.random.uniform(kk[2], (B3, T3), dtype=jnp.float32)
    pp3_f = tp3_f + 3.0 * jax.random.normal(kk[3], (B3, T3), dtype=jnp.float32)
    tw3 = tw3_f.astype(jnp.bfloat16)
    pw3 = pw3_f.astype(jnp.bfloat16)
    tp3 = tp3_f.astype(jnp.bfloat16)
    pp3 = pp3_f.astype(jnp.bfloat16)
    m3 = jax.random.uniform(kk[4], (B3, T3)) > 0.3          # bool mask

    out3 = intensity_loss(pw3, tw3, pp3, tp3, m3,
                          wind_weight=1.0, pressure_weight=0.5,
                          use_relative_error=True, max_block_rows=256)
    jax.block_until_ready(out3)
    # Reference on the same bf16 values upcast to f32 (matches in-kernel math).
    ref3 = _jnp_loss(pw3.astype(jnp.float32), tw3.astype(jnp.float32),
                     pp3.astype(jnp.float32), tp3.astype(jnp.float32),
                     m3.astype(jnp.float32), 1.0, 0.5, True)
    assert jnp.allclose(out3, ref3, rtol=1e-4, atol=1e-5), (out3, ref3)

    print("KERNEL_OK")
</pallas_src>

<mosaic_0001>
module attributes {stable_mosaic.version = 11 : i64} {
  func.func @_intensity_kernel(%arg0: i32, %arg1: i32, %arg2: memref<128x128xf32, #tpu.memory_space<vmem>>, %arg3: memref<128x128xf32, #tpu.memory_space<vmem>>, %arg4: memref<8x128xf32, #tpu.memory_space<vmem>>) attributes {dimension_semantics = [#tpu.dimension_semantics<arbitrary>, #tpu.dimension_semantics<arbitrary>], iteration_bounds = array<i64: 1, 7>, scalar_prefetch = 0 : i64, scratch_operands = 0 : i64, tpu.core_type = #tpu.core_type<tc>, window_params = [{transform_indices = @transform_0, window_bounds = array<i64: 128, 128>}, {transform_indices = @transform_1, window_bounds = array<i64: 128, 128>}, {transform_indices = @transform_2, window_bounds = array<i64: 8, 128>}]} {
    %c0_i32 = arith.constant 0 : i32
    %0 = arith.cmpi eq, %arg1, %c0_i32 : i32
    %1 = arith.extui %0 : i1 to i32
    %c0_i32_0 = arith.constant 0 : i32
    %2 = arith.cmpi ne, %1, %c0_i32_0 : i32
    scf.if %2 {
      %cst_9 = arith.constant 0.000000e+00 : f32
      %24 = vector.broadcast %cst_9 : f32 to vector<8x128xf32>
      %c0_10 = arith.constant 0 : index
      %c0_11 = arith.constant 0 : index
      %25 = vector.load %arg4[%c0_10, %c0_11] : memref<8x128xf32, #tpu.memory_space<vmem>>, vector<8x128xf32>
      tpu.vector_store %arg4[%c0_10, %c0_11], %24 {strides = array<i32>} : memref<8x128xf32, #tpu.memory_space<vmem>>, vector<8x128xf32>,
    } else {
    }
    %c7_i32 = arith.constant 7 : i32
    %3 = arith.muli %arg0, %c7_i32 : i32
    %4 = arith.addi %3, %arg1 : i32
    %c128_i32 = arith.constant 128 : i32
    %5 = arith.muli %4, %c128_i32 : i32
    %6 = tpu.iota {dimensions = array<i32: 0>} : vector<128x1xi32>
    %7 = vector.broadcast %5 : i32 to vector<128x1xi32>
    %8 = arith.addi %6, %7 : vector<128x1xi32>
    %c800_i32 = arith.constant 800 : i32
    %9 = vector.broadcast %c800_i32 : i32 to vector<128x1xi32>
    %10 = arith.cmpi slt, %8, %9 : vector<128x1xi32>
    %c0 = arith.constant 0 : index
    %c0_1 = arith.constant 0 : index
    %11 = vector.load %arg2[%c0, %c0_1] : memref<128x128xf32, #tpu.memory_space<vmem>>, vector<128x128xf32>
    %c0_2 = arith.constant 0 : index
    %c0_3 = arith.constant 0 : index
    %12 = vector.load %arg3[%c0_2, %c0_3] : memref<128x128xf32, #tpu.memory_space<vmem>>, vector<128x128xf32>
    %13 = arith.subf %11, %12 : vector<128x128xf32>
    %14 = arith.mulf %13, %13 : vector<128x128xf32>
    %c0_4 = arith.constant 0 : index
    %c0_5 = arith.constant 0 : index
    %15 = vector.load %arg4[%c0_4, %c0_5] : memref<8x128xf32, #tpu.memory_space<vmem>>, vector<8x128xf32>
    %cst = arith.constant 0.000000e+00 : f32
    %16 = vector.shape_cast %10 : vector<128x1xi1> to vector<128x1xi1>
    %17 = vector.broadcast %16 : vector<128x1xi1> to vector<128x128xi1>
    %18 = vector.broadcast %cst : f32 to vector<128x128xf32>
    %19 = arith.select %17, %14, %18 : vector<128x128xi1>, vector<128x128xf32>
    %20 = vector.shape_cast %19 : vector<128x128xf32> to vector<16x8x128xf32>
    %cst_6 = arith.constant dense<0.000000e+00> : vector<8x128xf32>
    %21 = vector.multi_reduction <add>, %20, %cst_6 [0] : vector<16x8x128xf32> to vector<8x128xf32>
    %22 = arith.addf %15, %21 : vector<8x128xf32>
    %c0_7 = arith.constant 0 : index
    %c0_8 = arith.constant 0 : index
    %23 = vector.load %arg4[%c0_7, %c0_8] : memref<8x128xf32, #tpu.memory_space<vmem>>, vector<8x128xf32>
    tpu.vector_store %arg4[%c0_7, %c0_8], %22 {strides = array<i32>} : memref<8x128xf32, #tpu.memory_space<vmem>>, vector<8x128xf32>,
    return
  }
  func.func @transform_0(%arg0: i32, %arg1: i32) -> (i32, i32) {
    %c7_i32 = arith.constant 7 : i32
    %0 = arith.muli %arg0, %c7_i32 : i32
    %1 = arith.addi %0, %arg1 : i32
    %c0_i32 = arith.constant 0 : i32
    %c0_i32_0 = arith.constant 0 : i32
    return %1, %c0_i32 : i32, i32
  }
  func.func @transform_1(%arg0: i32, %arg1: i32) -> (i32, i32) {
    %c7_i32 = arith.constant 7 : i32
    %0 = arith.muli %arg0, %c7_i32 : i32
    %1 = arith.addi %0, %arg1 : i32
    %c0_i32 = arith.constant 0 : i32
    %c0_i32_0 = arith.constant 0 : i32
    return %1, %c0_i32 : i32, i32
  }
  func.func @transform_2(%arg0: i32, %arg1: i32) -> (i32, i32) {
    %c0_i32 = arith.constant 0 : i32
    %c0_i32_0 = arith.constant 0 : i32
    return %arg0, %c0_i32 : i32, i32
  }
}

</mosaic_0001>

<bundles_post_ra>
// kernel: tpu_custom_call.1
= control target key start
LH: loop header
LB: loop body
LE: loop exit
PB: predicated region body
PF: predicated region fallthrough
CT: control target
= control target key end

     0   :  { %7 = vsyncpa [#allocation3], 0  ;;  %s1066_s0 = inlined_call_operand.hbm [shape: f32[800,128], index: 0, kind: input, shape index: {}]   ;;  %s1067_s1 = inlined_call_operand.hbm [shape: f32[800,128], index: 1, kind: input, shape index: {}]   ;;  %s1068_s2 = inlined_call_operand.hbm [shape: f32[8,128], index: 2, kind: output, shape index: {}]  }
   0x1   :  { %9 = vsyncpa [#allocation3 + $0x1], 0 }
   0x2   :  { %10 = vsyncpa [#allocation6], 0 }
   0x3   :  { %12 = vsyncpa [#allocation6 + $0x1], 0 }
   0x4   :  { %13 = vsyncpa [#allocation4], 0  ;;  %s817_s9 = smov 0   ;;  %s819_s10 = smov 0  }
   0x5   :  { %s821_s11 = smov 0   ;;  %s823_s12 = smov 0  }
   0x6   :  { %s825_s13 = smov 0   ;;  %s827_s14 = smov 0  }
   0x7 LB: > { %s538_s15 = sadd.s32 4294967295, %s792_s14   ;;  %s28_s16 = sadd.s32 1, %s788_s13  ;;  %s792_s14 = sphi %s827_s14, %s19_s14   ;;  %s788_s13 = sphi %s825_s13, %s1077_s13   ;;  %s784_s12 = sphi %s823_s12, %s1076_s12   ;;  %s780_s11 = sphi %s821_s11, %s1075_s11   ;;  %s776_s10 = sphi %s819_s10, %s1074_s10   ;;  %s772_s9 = sphi %s817_s9, %s1073_s9  }
   0x8   : > { %p29_p0 = scmp.ge.s32.totalorder %s28_s16, 7  ;;  %s42_s17 = sadd.s32 1, %s780_s11 }
   0x9   : > { %p49_p1 = scmp.ne.s32.totalorder %s780_s11, %s776_s10  ;;  %p50_p2 = scmp.eq.s32.totalorder %s792_s14, 0 }
   0xa   : > { %s1079_s16 = smov (%p29_p0, %s28_s16), 0  ;;  %p55_p4 = scmp.ne.s32.totalorder %s776_s10, %s772_s9 }
   0xb   : > { %p853_p3 = por %p50_p2, %p49_p1  ;;  %s39_s19 = ssub.s32 %s788_s13, %s1079_s16 }
   0xc   : > { %p56_p5 = scmp.eq.s32.totalorder %s538_s15, 0  ;;  %p40_p6 = scmp.eq.s32.totalorder %s39_s19, 0 }
   0xd   : > { %p540_p8 = scmp.ge.s32.totalorder %s792_s14, 7 }
   0xe   : > { %p862_p7 = por %p56_p5, %p55_p4 }
   0xf   : > { %s867_s21 = scalar_select %p40_p6, %s780_s11, %s42_s17  }
  0x10   : > { %131 = sbr.rel (%p540_p8) target bundleno = 93 (0x5d), region = 16 }
  0x15   : > { %134 = sbr.rel (!%p853_p3) target bundleno = 57 (0x39), region = 20  ;;  %s135_s22 = sand.u32 (%p853_p3), 1, %s780_s11  }
  0x16   : > { %s542_s23 = sshll.u32 (%p853_p3), %s788_s13, 4  ;;  %s541_s24 = sshll.u32 (%p853_p3), %s135_s22, 7 }
  0x17   : > { %s143_s25 = ssub.s32 (%p853_p3), 100, %s542_s23  ;;  %s877_s29 = scalar_lea.sflag (%p853_p3), [#allocation3], %s135_s22 }
  0x18   : > { %p144_p9 = scmp.lt.s32.totalorder (%p853_p3), %s143_s25, 16  ;;  %s139_s30 = scalar_lea.vmem (%p853_p3), [#allocation2], %s541_s24 }
  0x1a   : > { %s1081_s25 = smov (!%p144_p9, %s143_s25), 16 }
  0x1b   : > { %s543_s26 = sshll.u32 %s1081_s25, 3 }
  0x1c   : > { %s147_s27 = ssub.s32 128, %s543_s26 }
  0x1d   : > { %s148_s28 = sshll.u32 %s147_s27, 4 }
  0x1e   : > { %149 = vsyncadd %s877_s29, %s148_s28  ;;  %p880_p10 = scmp.ne.s32.totalorder %s543_s26, 0  ;;  %s564_s4 = sshll.u32 %s788_s13, 7 }
  0x1f   : > { %s152_s7 = scalar_lea.hbm %s1066_s0, %s564_s4  ;;  %s888_s8 = sshll.u32 %s139_s30, 4  ;;  %s157_s8 = int_to_ptr.vmem [resolvable:$true] %s888_s8 }
  0x20   : > { %s154_s9 = sshll.u32 %s152_s7, 4  ;;  %s547_s17 = sshll.u32 %s1081_s25, 7  ;;  %s891_s9 = int_to_ptr.hbm [resolvable:$true] %s154_s9 }
  0x21   : > { %s628_s19 = sshra.s32 %s891_s9, 4  ;;  %s630_s22 = sshrl.u32 %s547_s17, 4  ;;  %s629_s19 = int_to_ptr.hbm [resolvable:$true] %s628_s19 }
  0x22   : > { %s635_s23 = scalar_lea.hbm %s629_s19, %s630_s22  ;;  %s639_s27 = scalar_lea.hbm %s1066_s0, 800 }
  0x23   : > { %p636_p11 = scmp.ne.s32.totalorder %s629_s19, %s635_s23  ;;  %p641_p0 = scmp.lt.s32.totalorder %s639_s27, %s635_s23 }
  0x25   : > { %p637_p12 = pnand %p636_p11, %p880_p10 }
  0x27   : > { %p638_p13 = pneg %p637_p12 }
  0x29   : > { %p643_p1 = pnand %p641_p0, %p638_p13 }
  0x2b   : > { %646 = shalt.err (!%p643_p1)
}
  0x2c   : > { %s647_s28 = sshra.s32 %s157_s8, 4  ;;  %s794_s4 = smov [#allocation2]   ;;  %s648_s28 = int_to_ptr.vmem [resolvable:$true] %s647_s28 }
  0x2d   : > { %s654_s30 = scalar_lea.vmem %s648_s28, %s630_s22  ;;  %s658_s5 = scalar_lea.vmem %s794_s4, 256 }
  0x2e   : > { %p655_p2 = scmp.ne.s32.totalorder %s648_s28, %s654_s30  ;;  %p660_p6 = scmp.lt.s32.totalorder %s658_s5, %s654_s30 }
  0x30   : > { %p656_p4 = pnand %p655_p2, %p880_p10 }
  0x32   : > { %p657_p5 = pneg %p656_p4 }
  0x34   : > { %p662_p8 = pnand %p660_p6, %p657_p5 }
  0x36   : > { %665 = shalt.err (!%p662_p8)
}
  0x37   : > { %s795_s6 = smov 128   ;;  %s796_s7 = smov 8  }
  0x38   : > { %162 = dma.hbm_to_vmem [thread:$0]  (%p880_p10), %s891_s9, %s547_s17, %s157_s8, %s877_s29, %s795_s6, %s795_s6, %s796_s7  }
  0x39 PF: > { %165 = sbr.rel (!%p853_p3) target bundleno = 93 (0x5d), region = 24  ;;  %s166_s19 = sand.u32 (%p853_p3), 1, %s780_s11  }
  0x3a   : > { %s549_s22 = sshll.u32 (%p853_p3), %s788_s13, 4  ;;  %s548_s23 = sshll.u32 (%p853_p3), %s166_s19, 7 }
  0x3b   : > { %s174_s24 = ssub.s32 (%p853_p3), 100, %s549_s22  ;;  %s921_s28 = scalar_lea.sflag (%p853_p3), [#allocation6], %s166_s19 }
  0x3c   : > { %p175_p9 = scmp.lt.s32.totalorder (%p853_p3), %s174_s24, 16  ;;  %s170_s25 = scalar_lea.vmem (%p853_p3), [#allocation5], %s548_s23 }
  0x3e   : > { %s1083_s24 = smov (!%p175_p9, %s174_s24), 16 }
  0x3f   : > { %s550_s26 = sshll.u32 %s1083_s24, 3 }
  0x40   : > { %s178_s27 = ssub.s32 128, %s550_s26 }
  0x41   : > { %s179_s3 = sshll.u32 %s178_s27, 4 }
  0x42   : > { %180 = vsyncadd %s921_s28, %s179_s3  ;;  %p924_p3 = scmp.ne.s32.totalorder %s550_s26, 0  ;;  %s565_s29 = sshll.u32 %s788_s13, 7 }
  0x43   : > { %s183_s17 = scalar_lea.hbm %s1067_s1, %s565_s29  ;;  %s932_s30 = sshll.u32 %s170_s25, 4  ;;  %s188_s30 = int_to_ptr.vmem [resolvable:$true] %s932_s30 }
  0x44   : > { %s185_s4 = sshll.u32 %s183_s17, 4  ;;  %s554_s5 = sshll.u32 %s1083_s24, 7  ;;  %s935_s4 = int_to_ptr.hbm [resolvable:$true] %s185_s4 }
  0x45   : > { %s667_s6 = sshra.s32 %s935_s4, 4  ;;  %s669_s7 = sshrl.u32 %s554_s5, 4  ;;  %s668_s6 = int_to_ptr.hbm [resolvable:$true] %s667_s6 }
  0x46   : > { %s674_s19 = scalar_lea.hbm %s668_s6, %s669_s7  ;;  %s678_s26 = scalar_lea.hbm %s1067_s1, 800 }
  0x47   : > { %p675_p10 = scmp.ne.s32.totalorder %s668_s6, %s674_s19  ;;  %p680_p13 = scmp.lt.s32.totalorder %s678_s26, %s674_s19 }
  0x49   : > { %p676_p11 = pnand %p675_p10, %p924_p3 }
  0x4b   : > { %p677_p12 = pneg %p676_p11 }
  0x4d   : > { %p682_p0 = pnand %p680_p13, %p677_p12 }
  0x4f   : > { %685 = shalt.err (!%p682_p0)
}
  0x50   : > { %s686_s27 = sshra.s32 %s188_s30, 4  ;;  %s797_s25 = smov [#allocation5]   ;;  %s687_s27 = int_to_ptr.vmem [resolvable:$true] %s686_s27 }
  0x51   : > { %s693_s3 = scalar_lea.vmem %s687_s27, %s669_s7  ;;  %s697_s29 = scalar_lea.vmem %s797_s25, 256 }
  0x52   : > { %p694_p1 = scmp.ne.s32.totalorder %s687_s27, %s693_s3  ;;  %p699_p5 = scmp.lt.s32.totalorder %s697_s29, %s693_s3 }
  0x54   : > { %p695_p2 = pnand %p694_p1, %p924_p3 }
  0x56   : > { %p696_p4 = pneg %p695_p2 }
  0x58   : > { %p701_p6 = pnand %p699_p5, %p696_p4 }
  0x5a   : > { %704 = shalt.err (!%p701_p6)
}
  0x5b   : > { %s798_s8 = smov 128   ;;  %s799_s9 = smov 8  }
  0x5c   : > { %193 = dma.hbm_to_vmem [thread:$0]  (%p924_p3), %s935_s4, %s554_s5, %s188_s30, %s921_s28, %s798_s8, %s798_s8, %s799_s9  }
  0x5d PF: > { %p555_p8 = scmp.ge.s32.totalorder %s792_s14, 1  ;;  %p195_p9 = scmp.lt.s32.totalorder %s792_s14, 8 }
  0x5f   : > { %p196_p10 = pnand %p555_p8, %p195_p9 }
  0x60   : > { %s201_s17 = sand.u32 (!%p196_p10), 1, %s776_s10  }
  0x61   : > { %199 = sbr.rel (%p196_p10) target bundleno = 162 (0xa2), region = 28  ;;  %s556_s6 = sshll.u32 (!%p196_p10), %s201_s17, 7 }
  0x62   : > { %s202_s7 = scalar_lea.sflag (!%p196_p10), [#allocation3], %s201_s17  ;;  %s961_s19 = scalar_lea.vmem (!%p196_p10), [#allocation2], %s556_s6 }
  0x66   : > { %759 = dma.done.wait (%p862_p7), %s202_s7, 2048  }
  0x67   : > { %761 = vsyncadd (%p862_p7), %s202_s7, 4294965248  ;;  %s212_s24 = scalar_lea.sflag [#allocation6], %s201_s17  ;;  %s967_s28 = scalar_lea.vmem [#allocation5], %s556_s6 }
  0x68   : > { %763 = dma.done.wait (%p862_p7), %s212_s24, 2048  }
  0x69   : > { %765 = vsyncadd (%p862_p7), %s212_s24, 4294965248  ;;  %p558_p3 = scmp.ne.s32.totalorder %s784_s12, 0 }
  0x6b   : > { %254 = sbr.rel (%p558_p3) target bundleno = 114 (0x72), region = 40 }
  0x70   : > { %v800_v0 = vmov 0.0  }
  0x71   : > { %255 = vst [vmem:[#allocation7] sm:$0xff] %v800_v0 }
  0x72 PF: > { %v259_v1 = vlaneseq  ;;  %s559_s18 = sshll.u32 %s784_s12, 7  ;;  %v309_v3 = vld [vmem:[%s961_s19] sm:$0xff]  ;;  %v310_v5 = vld [vmem:[%s961_s19 + $0x8] sm:$0xff]  ;;  %v311_v10 = vld [vmem:[%s961_s19 + $0x10] sm:$0xff]  ;;  %s801_s12 = smov [#allocation7]  }
  0x73   : > { %v325_v6 = vld [vmem:[%s967_s28] sm:$0xff]  ;;  %v326_v7 = vld [vmem:[%s967_s28 + $0x8] sm:$0xff]  ;;  %v982_v8 = vstv %s559_s18  ;;  %v327_v11 = vld [vmem:[%s967_s28 + $0x10] sm:$0xff]  ;;  %s447_s20 = sshll.u32 %s801_s12, 4  ;;  %s449_s5 = sshll.u32 %s1068_s2, 4  ;;  %s448_s20 = int_to_ptr.vmem [resolvable:$true] %s447_s20  ;;  %s450_s5 = int_to_ptr.hbm [resolvable:$true] %s449_s5 }
  0x74   : > { %v974_v2 = vshrl.u32 %v259_v1, 7  ;;  %v341_v12 = vsub.f32 %v309_v3, %v325_v6  ;;  %v342_v13 = vsub.f32 %v310_v5, %v326_v7  ;;  %v312_v17 = vld [vmem:[%s961_s19 + $0x18] sm:$0xff]  ;;  %v343_v19 = vsub.f32 %v311_v10, %v327_v11  ;;  %v313_v22 = vld [vmem:[%s961_s19 + $0x20] sm:$0xff]  ;;  %v314_v29 = vld [vmem:[%s961_s19 + $0x28] sm:$0xff]  ;;  %p572_p7 = scmp.eq.s32.totalorder %s538_s15, 6 }
  0x75   : > { %v328_v18 = vld [vmem:[%s967_s28 + $0x18] sm:$0xff]  ;;  %v329_v23 = vld [vmem:[%s967_s28 + $0x20] sm:$0xff]  ;;  %v330_v30 = vld [vmem:[%s967_s28 + $0x28] sm:$0xff] }
  0x76   : > { %v261_v4 = vadd.s32 8, %v974_v2  ;;  %v262_v9 = vadd.s32 16, %v974_v2  ;;  %v263_v14 = vadd.s32 24, %v974_v2  ;;  %v277_v15 = vadd.s32 %v982_v8, %v974_v2  ;;  %v315_v35 = vld [vmem:[%s961_s19 + $0x30] sm:$0xff]  ;;  %v316_v43 = vld [vmem:[%s961_s19 + $0x38] sm:$0xff]  ;;  %v317_v50 = vld [vmem:[%s961_s19 + $0x40] sm:$0xff] }
  0x77   : > { %v264_v20 = vadd.s32 32, %v974_v2  ;;  %v344_v24 = vsub.f32 %v312_v17, %v328_v18  ;;  %v357_v25 = vmul.f32 %v341_v12, %v341_v12  ;;  %v358_v26 = vmul.f32 %v342_v13, %v342_v13  ;;  %v331_v36 = vld [vmem:[%s967_s28 + $0x30] sm:$0xff]  ;;  %v332_v44 = vld [vmem:[%s967_s28 + $0x38] sm:$0xff]  ;;  %v333_v51 = vld [vmem:[%s967_s28 + $0x40] sm:$0xff] }
  0x78   : > { %v278_v16 = vadd.s32 %v982_v8, %v261_v4  ;;  %v279_v21 = vadd.s32 %v982_v8, %v262_v9  ;;  %v265_v27 = vadd.s32 40, %v974_v2  ;;  %v280_v28 = vadd.s32 %v982_v8, %v263_v14  ;;  %v318_v58 = vld [vmem:[%s961_s19 + $0x48] sm:$0xff]  ;;  %v319_v3 = vld [vmem:[%s961_s19 + $0x50] sm:$0xff]  ;;  %v320_v12 = vld [vmem:[%s961_s19 + $0x58] sm:$0xff] }
  0x79   : > { %vm293_vm0 = vcmp.lt.s32.totalorder %v277_v15, 800  ;;  %v345_v31 = vsub.f32 %v313_v22, %v329_v23  ;;  %v359_v32 = vmul.f32 %v343_v19, %v343_v19  ;;  %v266_v33 = vadd.s32 48, %v974_v2  ;;  %v334_v59 = vld [vmem:[%s967_s28 + $0x48] sm:$0xff]  ;;  %v335_v4 = vld [vmem:[%s967_s28 + $0x50] sm:$0xff]  ;;  %v336_v13 = vld [vmem:[%s967_s28 + $0x58] sm:$0xff] }
  0x7a   : > { %vm294_vm1 = vcmp.lt.s32.totalorder %v278_v16, 800  ;;  %v281_v34 = vadd.s32 %v982_v8, %v264_v20  ;;  %vm295_vm2 = vcmp.lt.s32.totalorder %v279_v21, 800  ;;  %v346_v37 = vsub.f32 %v314_v29, %v330_v30  ;;  %v321_v20 = vld [vmem:[%s961_s19 + $0x60] sm:$0xff]  ;;  %v338_v29 = vld [vmem:[%s967_s28 + $0x68] sm:$0xff] }
  0x7b   : > { %v360_v38 = vmul.f32 %v344_v24, %v344_v24  ;;  %v406_v39 = vsel %vm293_vm0, %v357_v25, 0.0  ;;  %v407_v40 = vsel %vm294_vm1, %v358_v26, 0.0  ;;  %v267_v41 = vadd.s32 56, %v974_v2  ;;  %v337_v21 = vld [vmem:[%s967_s28 + $0x60] sm:$0xff] }
  0x7c   : > { %v282_v42 = vadd.s32 %v982_v8, %v265_v27  ;;  %vm296_vm3 = vcmp.lt.s32.totalorder %v280_v28, 800  ;;  %v347_v45 = vsub.f32 %v315_v35, %v331_v36  ;;  %v361_v46 = vmul.f32 %v345_v31, %v345_v31  ;;  %v322_v28 = vld [vmem:[%s961_s19 + $0x68] sm:$0xff]  ;;  %v323_v36 = vld [vmem:[%s961_s19 + $0x70] sm:$0xff] }
  0x7d   : > { %v408_v47 = vsel %vm295_vm2, %v359_v32, 0.0  ;;  %v268_v48 = vadd.s32 64, %v974_v2  ;;  %v283_v49 = vadd.s32 %v982_v8, %v266_v33  ;;  %vm297_vm4 = vcmp.lt.s32.totalorder %v281_v34, 800 }
  0x7e   : > { %v422_v52 = vadd.f32 %v407_v40, %v406_v39  ;;  %v348_v53 = vsub.f32 %v316_v43, %v332_v44  ;;  %v362_v54 = vmul.f32 %v346_v37, %v346_v37  ;;  %v409_v55 = vsel %vm296_vm3, %v360_v38, 0.0  ;;  %v339_v37 = vld [vmem:[%s967_s28 + $0x70] sm:$0xff]  ;;  %v324_v44 = vld [vmem:[%s961_s19 + $0x78] sm:$0xff] }
  0x7f   : > { %v269_v56 = vadd.s32 72, %v974_v2  ;;  %v284_v57 = vadd.s32 %v982_v8, %v267_v41  ;;  %vm298_vm5 = vcmp.lt.s32.totalorder %v282_v42, 800  ;;  %v349_v61 = vsub.f32 %v317_v50, %v333_v51 }
  0x80   : > { %v423_v60 = vadd.f32 %v422_v52, %v408_v47  ;;  %v363_v62 = vmul.f32 %v347_v45, %v347_v45  ;;  %v410_v63 = vsel %vm297_vm4, %v361_v46, 0.0  ;;  %v270_v0 = vadd.s32 80, %v974_v2  ;;  %v340_v45 = vld [vmem:[%s967_s28 + $0x78] sm:$0xff] }
  0x81   : > { %v285_v1 = vadd.s32 %v982_v8, %v268_v48  ;;  %vm299_vm6 = vcmp.lt.s32.totalorder %v283_v49, 800  ;;  %v350_v6 = vsub.f32 %v318_v58, %v334_v59  ;;  %v364_v7 = vmul.f32 %v348_v53, %v348_v53 }
  0x82   : > { %v424_v5 = vadd.f32 %v423_v60, %v409_v55  ;;  %v411_v9 = vsel %vm298_vm5, %v362_v54, 0.0  ;;  %v271_v10 = vadd.s32 88, %v974_v2  ;;  %v286_v11 = vadd.s32 %v982_v8, %v269_v56 }
  0x83   : > { %vm300_vm7 = vcmp.lt.s32.totalorder %v284_v57, 800  ;;  %v351_v15 = vsub.f32 %v319_v3, %v335_v4  ;;  %v365_v16 = vmul.f32 %v349_v61, %v349_v61  ;;  %v412_v17 = vsel %vm299_vm6, %v363_v62, 0.0  ;;  %v373_v3 = vld [vmem:[#allocation7] sm:$0xff] }
  0x84   : > { %v425_v14 = vadd.f32 %v424_v5, %v410_v63  ;;  %v272_v18 = vadd.s32 96, %v974_v2  ;;  %v287_v19 = vadd.s32 %v982_v8, %v270_v0  ;;  %vm301_vm8 = vcmp.lt.s32.totalorder %v285_v1, 800 }
  0x85   : > { %v352_v23 = vsub.f32 %v320_v12, %v336_v13  ;;  %v366_v24 = vmul.f32 %v350_v6, %v350_v6  ;;  %v413_v25 = vsel %vm300_vm7, %v364_v7, 0.0  ;;  %v273_v26 = vadd.s32 104, %v974_v2 }
  0x86   : > { %v426_v22 = vadd.f32 %v425_v14, %v411_v9  ;;  %v288_v27 = vadd.s32 %v982_v8, %v271_v10  ;;  %vm302_vm9 = vcmp.lt.s32.totalorder %v286_v11, 800  ;;  %v353_v31 = vsub.f32 %v321_v20, %v337_v21 }
  0x87   : > { %v367_v32 = vmul.f32 %v351_v15, %v351_v15  ;;  %v414_v33 = vsel %vm301_vm8, %v365_v16, 0.0  ;;  %v274_v34 = vadd.s32 112, %v974_v2  ;;  %v289_v35 = vadd.s32 %v982_v8, %v272_v18 }
  0x88   : > { %v427_v30 = vadd.f32 %v426_v22, %v412_v17  ;;  %vm303_vm10 = vcmp.lt.s32.totalorder %v287_v19, 800  ;;  %v354_v39 = vsub.f32 %v322_v28, %v338_v29  ;;  %v368_v40 = vmul.f32 %v352_v23, %v352_v23 }
  0x89   : > { %v415_v41 = vsel %vm302_vm9, %v366_v24, 0.0  ;;  %v275_v42 = vadd.s32 120, %v974_v2  ;;  %v290_v43 = vadd.s32 %v982_v8, %v273_v26  ;;  %vm304_vm11 = vcmp.lt.s32.totalorder %v288_v27, 800 }
  0x8a   : > { %v428_v38 = vadd.f32 %v427_v30, %v413_v25  ;;  %v355_v47 = vsub.f32 %v323_v36, %v339_v37  ;;  %v369_v48 = vmul.f32 %v353_v31, %v353_v31  ;;  %v416_v49 = vsel %vm303_vm10, %v367_v32, 0.0 }
  0x8b   : > { %v291_v50 = vadd.s32 %v982_v8, %v274_v34  ;;  %vm305_vm12 = vcmp.lt.s32.totalorder %v289_v35, 800  ;;  %v356_v52 = vsub.f32 %v324_v44, %v340_v45  ;;  %v370_v53 = vmul.f32 %v354_v39, %v354_v39 }
  0x8c   : > { %v429_v46 = vadd.f32 %v428_v38, %v414_v33  ;;  %v417_v54 = vsel %vm304_vm11, %v368_v40, 0.0  ;;  %v292_v55 = vadd.s32 %v982_v8, %v275_v42  ;;  %vm306_vm13 = vcmp.lt.s32.totalorder %v290_v43, 800 }
  0x8d   : > { %v371_v56 = vmul.f32 %v355_v47, %v355_v47  ;;  %v418_v57 = vsel %vm305_vm12, %v369_v48, 0.0  ;;  %vm307_vm14 = vcmp.lt.s32.totalorder %v291_v50, 800  ;;  %v372_v59 = vmul.f32 %v356_v52, %v356_v52 }
  0x8e   : > { %v430_v51 = vadd.f32 %v429_v46, %v415_v41  ;;  %v419_v60 = vsel %vm306_vm13, %v370_v53, 0.0  ;;  %vm308_vm15 = vcmp.lt.s32.totalorder %v292_v55, 800 }
  0x8f   : > { %v420_v62 = vsel %vm307_vm14, %v371_v56, 0.0  ;;  %v421_v0 = vsel %vm308_vm15, %v372_v59, 0.0 }
  0x90   : > { %v431_v2 = vadd.f32 %v430_v51, %v416_v49 }
  0x92   : > { %v432_v58 = vadd.f32 %v431_v2, %v417_v54 }
  0x94   : > { %v433_v61 = vadd.f32 %v432_v58, %v418_v57 }
  0x96   : > { %v434_v63 = vadd.f32 %v433_v61, %v419_v60 }
  0x98   : > { %v435_v1 = vadd.f32 %v434_v63, %v420_v62 }
  0x9a   : > { %v436_v8 = vadd.f32 %v435_v1, %v421_v0 }
  0x9c   : > { %v437_v4 = vadd.f32 %v436_v8, %v373_v3 }
  0x9e   : > { %438 = vst [vmem:[#allocation7] sm:$0xff] %v437_v4 }
  0x9f   : > { %569 = dma.vmem_to_hbm [thread:$0]  (%p572_p7), %s448_s20, 128, %s450_s5, [#allocation4]  }
  0xa0   : > { %767 = dma.done.wait (%p572_p7), [#allocation4], 128  }
  0xa1   : > { %769 = vsyncadd (%p572_p7), [#allocation4], 4294967168 }
  0xa2 PF: > { %s19_s14 = sadd.s32 1, %s792_s14   ;;  %s1073_s9 = smov %s776_s10 }
  0xa3   : > { %p16_p11 = scmp.ge.s32.totalorder %s19_s14, 9   ;;  %s1074_s10 = smov %s780_s11 }
  0xa4   : > { %s1075_s11 = smov %s867_s21  ;;  %s1076_s12 = smov %s788_s13 }
  0xa5   : > { %s1077_s13 = smov %s1079_s16  ;;  %18 = sbr.rel (!%p16_p11) target bundleno = 7 (0x7), region = 83 }
  0xaa   :  { %463 = vsyncpa [#allocation3], 1 }
  0xab   :  { %465 = vsyncpa [#allocation3 + $0x1], 1 }
  0xac   :  { %466 = vsyncpa [#allocation6], 1 }
  0xad   :  { %468 = vsyncpa [#allocation6 + $0x1], 1 }
  0xae   :  { %469 = vsyncpa [#allocation4], 1 }
  0xaf   :  { %471 = vsyncpa [#allocation4 + $0x1], 1 }

</bundles_post_ra>
